<compile_context>
chip_gen: v6e
topology: v6e:2x2x1
jax: 0.10.0
libtpu: 0.0.40
codegen_flags: <defaults>
</compile_context>

<pallas_src>
import functools

import jax
import jax.numpy as jnp
from jax.experimental import pallas as pl
from jax.experimental.pallas import tpu as pltpu

_EPS = 1e-6
_NUM_STATS = 3                         # [sum(ce), sum(p+t), sum(p*t)]
_STATS_WIDTH = 8                       # padded lane width for the packed stats output
_VMEM_INPUT_BUDGET = 32 * 1024 * 1024  # 2 inputs x 2 pipeline buffers of input blocks
_VMEM_LIMIT_BYTES = 48 * 1024 * 1024   # explicit scoped-VMEM limit (fits v5e/v6e/v7x)


def _vat_stats_kernel(pred_ref, target_ref, stats_ref, *,
                      n_rows, n_cols, row_pad, col_pad):
    """Streams one (tm, tn) tile of (B*C, N) and accumulates packed per-row stats.

    stats_ref: (tm, 8) f32 accumulator, resident across the N (j) grid axis.
      lane 0: sum over N of the elementwise binary-CE term
      lane 1: sum over N of (p + t)
      lane 2: sum over N of (p * t)
    """
    i = pl.program_id(0)   # row tile   (parallel)
    j = pl.program_id(1)   # N tile     (arbitrary / reduction)

    @pl.when(j == 0)
    def _init():
        stats_ref[...] = jnp.zeros_like(stats_ref)

    p = pred_ref[...].astype(jnp.float32)
    t = target_ref[...].astype(jnp.float32)
    tm, tn = p.shape

    def _accumulate(mask):
        pp, tt = p, t
        if mask is not None:
            pp = jnp.where(mask, pp, 0.0)
            tt = jnp.where(mask, tt, 0.0)
        # Binary-CE elementwise term; both logs kept (targets may be soft).
        ce = -(1.0 - tt) * jnp.log(1.0 - pp + _EPS) - tt * jnp.log(pp + _EPS)
        if mask is not None:
            # zeroed (p, t) would still contribute -log(1 + eps); mask it out.
            ce = jnp.where(mask, ce, 0.0)
        s_ce = jnp.sum(ce, axis=-1, keepdims=True)        # (tm, 1)
        s_sum = jnp.sum(pp + tt, axis=-1, keepdims=True)  # (tm, 1)
        s_prod = jnp.sum(pp * tt, axis=-1, keepdims=True)  # (tm, 1)
        pad = jnp.zeros((tm, _STATS_WIDTH - _NUM_STATS), jnp.float32)
        stats_ref[...] += jnp.concatenate([s_ce, s_sum, s_prod, pad], axis=-1)

    if not (row_pad or col_pad):
        # Static fast path: shapes tile exactly, no masking code emitted at all.
        _accumulate(None)
    else:
        is_edge = None
        if row_pad:
            is_edge = (i == pl.num_programs(0) - 1)
        if col_pad:
            edge_j = (j == pl.num_programs(1) - 1)
            is_edge = edge_j if is_edge is None else (is_edge | edge_j)

        @pl.when(jnp.logical_not(is_edge))
        def _interior():
            _accumulate(None)

        @pl.when(is_edge)
        def _edge():
            mask = None
            if row_pad:
                row_ids = jax.lax.broadcasted_iota(jnp.int32, (tm, tn), 0) + i * tm
                mask = row_ids < n_rows
            if col_pad:
                col_ids = jax.lax.broadcasted_iota(jnp.int32, (tm, tn), 1) + j * tn
                cmask = col_ids < n_cols
                mask = cmask if mask is None else (mask & cmask)
            _accumulate(mask)


@functools.partial(jax.jit, static_argnames=("tm", "tn"))
def vat_loss_validate(pred_bcn, target_bcn, *, tm=None, tn=None):
    """CELoss + DICELoss of VATLoss.forward (validate / warmup branch).

    pred_bcn, target_bcn: (B, C, N) arrays (channel-first, points last — the raw
    model-output layout; the PyTorch `.permute(0, 2, 1)` to (B, N, C) is layout
    plumbing that this port skips).  pred must be a probability in [0, 1] (post
    sigmoid) and target >= 0.  f32 or bf16 inputs accepted; accumulation is f32.
    tm/tn=None -> auto tile selection (recommended).
    """
    B, C, N = pred_bcn.shape
    BC = B * C

    # Free reshape (contiguous leading-dim merge) — no HBM transpose.
    p2 = pred_bcn.reshape(BC, N)
    t2 = target_bcn.reshape(BC, N)
    itemsize = jnp.dtype(pred_bcn.dtype).itemsize

    # ---- row tile: full BC, or a multiple of 8 aiming for 2 row tiles (v7x megacore).
    if tm is None:
        if BC <= 8:
            tm_eff = BC
        else:
            tm_eff = ((BC + 1) // 2 + 7) // 8 * 8
            if tm_eff >= BC:
                tm_eff = BC
    else:
        tm_eff = BC if tm >= BC else max(8, (tm // 8) * 8)

    # ---- N tile: as large as the double-buffered VMEM input budget allows.
    if tn is None:
        tn_budget = _VMEM_INPUT_BUDGET // (4 * tm_eff * itemsize)
        tn_eff = N if tn_budget >= N else max(128, (tn_budget // 128) * 128)
    else:
        tn_eff = N if tn >= N else max(128, (tn // 128) * 128)

    row_pad = (BC % tm_eff) != 0
    col_pad = (N % tn_eff) != 0

    grid = (pl.cdiv(BC, tm_eff), pl.cdiv(N, tn_eff))

    kernel = functools.partial(_vat_stats_kernel, n_rows=BC, n_cols=N,
                               row_pad=row_pad, col_pad=col_pad)

    in_spec = pl.BlockSpec((tm_eff, tn_eff), lambda i, j: (i, j))
    stats_spec = pl.BlockSpec((tm_eff, _STATS_WIDTH), lambda i, j: (i, 0))

    stats = pl.pallas_call(
        kernel,
        out_shape=jax.ShapeDtypeStruct((BC, _STATS_WIDTH), jnp.float32),
        grid_spec=pltpu.PrefetchScalarGridSpec(
            num_scalar_prefetch=0,
            grid=grid,
            in_specs=[in_spec, in_spec],
            out_specs=stats_spec,
        ),
        compiler_params=pltpu.CompilerParams(
            # Row tiles are independent -> megacore-shardable on v7x; the N axis
            # carries the accumulator and stays sequential.
            dimension_semantics=("parallel", "arbitrary"),
            vmem_limit_bytes=_VMEM_LIMIT_BYTES,
        ),
    )(p2, t2)

    s_ce = stats[:, 0]     # sum over N of ce term
    s_sum = stats[:, 1]    # sum(p) + sum(t)
    s_pt = stats[:, 2]     # sum(p * t)

    # ---- scalar epilogue on (B*C,) vectors --------------------------------
    n_f = jnp.float32(N)
    ce_loss = jnp.sum(s_ce) / jnp.float32(B * N)

    # abs() is redundant for sigmoid probabilities / non-negative targets.
    dice_pos = (s_pt + _EPS) / (s_sum + _EPS)
    inter_neg = n_f - s_sum + s_pt              # sum((1-p)*(1-t)) folded
    card_neg = 2.0 * n_f - s_sum                # sum(2 - |p| - |t|) folded
    dice_neg = (inter_neg + _EPS) / (card_neg + _EPS)

    dice_loss = jnp.sum(1.5 - dice_pos - dice_neg) / jnp.float32(B)
    return ce_loss + dice_loss


def _reference_bnc(pred, target):
    """Pure-JAX line-by-line transcription of the PyTorch forward, (B, N, C) layout."""
    temp = -(1.0 - target) * jnp.log(1.0 - pred + _EPS) - target * jnp.log(pred + _EPS)
    ce = jnp.sum(jnp.mean(temp, axis=(0, 1)))
    ip = jnp.sum(pred * target, axis=1)
    cp = jnp.sum(jnp.abs(pred) + jnp.abs(target), axis=1)
    dp = (ip + _EPS) / (cp + _EPS)
    i_n = jnp.sum((1.0 - pred) * (1.0 - target), axis=1)
    c_n = jnp.sum(2.0 - jnp.abs(pred) - jnp.abs(target), axis=1)
    dn = (i_n + _EPS) / (c_n + _EPS)
    dice = jnp.sum(jnp.mean(1.5 - dp - dn, axis=0))
    return ce + dice


if __name__ == "__main__":
    key = jax.random.PRNGKey(0)

    def make_inputs(k, B, C, N):
        k1, k2 = jax.random.split(k)
        logits = jax.random.normal(k1, (B, C, N), dtype=jnp.float32)
        pred = jax.nn.sigmoid(logits)                                  # probabilities
        tgt = (jax.random.uniform(k2, (B, C, N)) > 0.5).astype(jnp.float32)
        return pred, tgt

    # Small shapes covering: (a) partial row + column tiles (edge-masked branch),
    # (b) exact tiling (pure fast path), (c) auto tile selection (full-N block).
    configs = [
        (3, 4, 600, 8, 256),      # grid (2, 3), row & col padding
        (2, 4, 512, 8, 256),      # grid (1, 2), exact tiles
        (2, 4, 777, None, None),  # auto tiles: single full-N block per row tile
    ]

    for B, C, N, tm, tn in configs:
        key, sub = jax.random.split(key)
        pred_bcn, target_bcn = make_inputs(sub, B, C, N)
        loss = vat_loss_validate(pred_bcn, target_bcn, tm=tm, tn=tn)
        loss = jax.block_until_ready(loss)
        # Reference computed in the original PyTorch (B, N, C) convention.
        ref = _reference_bnc(jnp.transpose(pred_bcn, (0, 2, 1)),
                             jnp.transpose(target_bcn, (0, 2, 1)))
        assert jnp.allclose(loss, ref, rtol=1e-5, atol=1e-5), (B, C, N, loss, ref)

    print("KERNEL_OK")
</pallas_src>

<mosaic_0001>
module attributes {stable_mosaic.version = 11 : i64} {
  func.func @_vat_stats_kernel(%arg0: i32, %arg1: i32, %arg2: memref<8x256xf32, #tpu.memory_space<vmem>>, %arg3: memref<8x256xf32, #tpu.memory_space<vmem>>, %arg4: memref<8x8xf32, #tpu.memory_space<vmem>>) attributes {dimension_semantics = [#tpu.dimension_semantics<parallel>, #tpu.dimension_semantics<arbitrary>], iteration_bounds = array<i64: 2, 3>, scalar_prefetch = 0 : i64, scratch_operands = 0 : i64, tpu.core_type = #tpu.core_type<tc>, window_params = [{transform_indices = @transform_0, window_bounds = array<i64: 8, 256>}, {transform_indices = @transform_1, window_bounds = array<i64: 8, 256>}, {transform_indices = @transform_2, window_bounds = array<i64: 8, 8>}]} {
    %c0_i32 = arith.constant 0 : i32
    %0 = arith.cmpi eq, %arg1, %c0_i32 : i32
    %1 = arith.extui %0 : i1 to i32
    %c0_i32_0 = arith.constant 0 : i32
    %2 = arith.cmpi ne, %1, %c0_i32_0 : i32
    scf.if %2 {
      %cst = arith.constant 0.000000e+00 : f32
      %13 = vector.broadcast %cst : f32 to vector<8x8xf32>
      %c0_6 = arith.constant 0 : index
      %c0_7 = arith.constant 0 : index
      %14 = vector.load %arg4[%c0_6, %c0_7] : memref<8x8xf32, #tpu.memory_space<vmem>>, vector<8x8xf32>
      tpu.vector_store %arg4[%c0_6, %c0_7], %13 {strides = array<i32>} : memref<8x8xf32, #tpu.memory_space<vmem>>, vector<8x8xf32>,
    } else {
    }
    %c0 = arith.constant 0 : index
    %c0_1 = arith.constant 0 : index
    %3 = vector.load %arg2[%c0, %c0_1] : memref<8x256xf32, #tpu.memory_space<vmem>>, vector<8x256xf32>
    %c0_2 = arith.constant 0 : index
    %c0_3 = arith.constant 0 : index
    %4 = vector.load %arg3[%c0_2, %c0_3] : memref<8x256xf32, #tpu.memory_space<vmem>>, vector<8x256xf32>
    %c1_i32 = arith.constant 1 : i32
    %5 = arith.cmpi eq, %arg0, %c1_i32 : i32
    %c2_i32 = arith.constant 2 : i32
    %6 = arith.cmpi eq, %arg1, %c2_i32 : i32
    %7 = arith.ori %5, %6 : i1
    %true = arith.constant true
    %8 = arith.xori %7, %true : i1
    %9 = arith.extui %8 : i1 to i32
    %c0_i32_4 = arith.constant 0 : i32
    %10 = arith.cmpi ne, %9, %c0_i32_4 : i32
    scf.if %10 {
      %cst = arith.constant 1.000000e+00 : f32
      %13 = vector.broadcast %cst : f32 to vector<8x256xf32>
      %14 = arith.subf %13, %4 : vector<8x256xf32>
      %cst_6 = arith.constant 0.000000e+00 : f32
      %15 = vector.broadcast %cst_6 : f32 to vector<8x256xf32>
      %16 = arith.subf %15, %14 : vector<8x256xf32>
      %cst_7 = arith.constant 1.000000e+00 : f32
      %17 = vector.broadcast %cst_7 : f32 to vector<8x256xf32>
      %18 = arith.subf %17, %3 : vector<8x256xf32>
      %cst_8 = arith.constant 9.99999997E-7 : f32
      %19 = vector.broadcast %cst_8 : f32 to vector<8x256xf32>
      %20 = arith.addf %18, %19 : vector<8x256xf32>
      %21 = math.log %20 : vector<8x256xf32>
      %22 = arith.mulf %16, %21 : vector<8x256xf32>
      %cst_9 = arith.constant 9.99999997E-7 : f32
      %23 = vector.broadcast %cst_9 : f32 to vector<8x256xf32>
      %24 = arith.addf %3, %23 : vector<8x256xf32>
      %25 = math.log %24 : vector<8x256xf32>
      %26 = arith.mulf %4, %25 : vector<8x256xf32>
      %27 = arith.subf %22, %26 : vector<8x256xf32>
      %cst_10 = arith.constant dense<0.000000e+00> : vector<8xf32>
      %28 = vector.multi_reduction <add>, %27, %cst_10 [1] : vector<8x256xf32> to vector<8xf32>
      %29 = vector.shape_cast %28 : vector<8xf32> to vector<8x1xf32>
      %30 = arith.addf %3, %4 : vector<8x256xf32>
      %cst_11 = arith.constant dense<0.000000e+00> : vector<8xf32>
      %31 = vector.multi_reduction <add>, %30, %cst_11 [1] : vector<8x256xf32> to vector<8xf32>
      %32 = vector.shape_cast %31 : vector<8xf32> to vector<8x1xf32>
      %33 = arith.mulf %3, %4 : vector<8x256xf32>
      %cst_12 = arith.constant dense<0.000000e+00> : vector<8xf32>
      %34 = vector.multi_reduction <add>, %33, %cst_12 [1] : vector<8x256xf32> to vector<8xf32>
      %35 = vector.shape_cast %34 : vector<8xf32> to vector<8x1xf32>
      %cst_13 = arith.constant 0.000000e+00 : f32
      %36 = vector.broadcast %cst_13 : f32 to vector<8x5xf32>
      %c0_14 = arith.constant 0 : index
      %c0_15 = arith.constant 0 : index
      %37 = vector.load %arg4[%c0_14, %c0_15] : memref<8x8xf32, #tpu.memory_space<vmem>>, vector<8x8xf32>
      %38 = tpu.concatenate %29, %32, %35, %36 in 1 : vector<8x1xf32>, vector<8x1xf32>, vector<8x1xf32>, vector<8x5xf32> -> vector<8x8xf32>
      %39 = arith.addf %37, %38 : vector<8x8xf32>
      %c0_16 = arith.constant 0 : index
      %c0_17 = arith.constant 0 : index
      %40 = vector.load %arg4[%c0_16, %c0_17] : memref<8x8xf32, #tpu.memory_space<vmem>>, vector<8x8xf32>
      tpu.vector_store %arg4[%c0_16, %c0_17], %39 {strides = array<i32>} : memref<8x8xf32, #tpu.memory_space<vmem>>, vector<8x8xf32>,
    } else {
    }
    %11 = arith.extui %7 : i1 to i32
    %c0_i32_5 = arith.constant 0 : i32
    %12 = arith.cmpi ne, %11, %c0_i32_5 : i32
    scf.if %12 {
      %13 = tpu.iota {dimensions = array<i32: 0>} : vector<8x256xi32>
      %c8_i32 = arith.constant 8 : i32
      %14 = arith.muli %arg0, %c8_i32 : i32
      %15 = vector.broadcast %14 : i32 to vector<8x256xi32>
      %16 = arith.addi %13, %15 : vector<8x256xi32>
      %c12_i32 = arith.constant 12 : i32
      %17 = vector.broadcast %c12_i32 : i32 to vector<8x256xi32>
      %18 = arith.cmpi slt, %16, %17 : vector<8x256xi32>
      %19 = tpu.iota {dimensions = array<i32: 1>} : vector<8x256xi32>
      %c256_i32 = arith.constant 256 : i32
      %20 = arith.muli %arg1, %c256_i32 : i32
      %21 = vector.broadcast %20 : i32 to vector<8x256xi32>
      %22 = arith.addi %19, %21 : vector<8x256xi32>
      %c600_i32 = arith.constant 600 : i32
      %23 = vector.broadcast %c600_i32 : i32 to vector<8x256xi32>
      %24 = arith.cmpi slt, %22, %23 : vector<8x256xi32>
      %25 = arith.andi %18, %24 : vector<8x256xi1>
      %cst = arith.constant 0.000000e+00 : f32
      %26 = vector.broadcast %cst : f32 to vector<8x256xf32>
      %27 = arith.select %25, %3, %26 : vector<8x256xi1>, vector<8x256xf32>
      %cst_6 = arith.constant 0.000000e+00 : f32
      %28 = vector.broadcast %cst_6 : f32 to vector<8x256xf32>
      %29 = arith.select %25, %4, %28 : vector<8x256xi1>, vector<8x256xf32>
      %cst_7 = arith.constant 1.000000e+00 : f32
      %30 = vector.broadcast %cst_7 : f32 to vector<8x256xf32>
      %31 = arith.subf %30, %29 : vector<8x256xf32>
      %cst_8 = arith.constant 0.000000e+00 : f32
      %32 = vector.broadcast %cst_8 : f32 to vector<8x256xf32>
      %33 = arith.subf %32, %31 : vector<8x256xf32>
      %cst_9 = arith.constant 1.000000e+00 : f32
      %34 = vector.broadcast %cst_9 : f32 to vector<8x256xf32>
      %35 = arith.subf %34, %27 : vector<8x256xf32>
      %cst_10 = arith.constant 9.99999997E-7 : f32
      %36 = vector.broadcast %cst_10 : f32 to vector<8x256xf32>
      %37 = arith.addf %35, %36 : vector<8x256xf32>
      %38 = math.log %37 : vector<8x256xf32>
      %39 = arith.mulf %33, %38 : vector<8x256xf32>
      %cst_11 = arith.constant 9.99999997E-7 : f32
      %40 = vector.broadcast %cst_11 : f32 to vector<8x256xf32>
      %41 = arith.addf %27, %40 : vector<8x256xf32>
      %42 = math.log %41 : vector<8x256xf32>
      %43 = arith.mulf %29, %42 : vector<8x256xf32>
      %44 = arith.subf %39, %43 : vector<8x256xf32>
      %cst_12 = arith.constant 0.000000e+00 : f32
      %45 = vector.broadcast %cst_12 : f32 to vector<8x256xf32>
      %46 = arith.select %25, %44, %45 : vector<8x256xi1>, vector<8x256xf32>
      %cst_13 = arith.constant dense<0.000000e+00> : vector<8xf32>
      %47 = vector.multi_reduction <add>, %46, %cst_13 [1] : vector<8x256xf32> to vector<8xf32>
      %48 = vector.shape_cast %47 : vector<8xf32> to vector<8x1xf32>
      %49 = arith.addf %27, %29 : vector<8x256xf32>
      %cst_14 = arith.constant dense<0.000000e+00> : vector<8xf32>
      %50 = vector.multi_reduction <add>, %49, %cst_14 [1] : vector<8x256xf32> to vector<8xf32>
      %51 = vector.shape_cast %50 : vector<8xf32> to vector<8x1xf32>
      %52 = arith.mulf %27, %29 : vector<8x256xf32>
      %cst_15 = arith.constant dense<0.000000e+00> : vector<8xf32>
      %53 = vector.multi_reduction <add>, %52, %cst_15 [1] : vector<8x256xf32> to vector<8xf32>
      %54 = vector.shape_cast %53 : vector<8xf32> to vector<8x1xf32>
      %cst_16 = arith.constant 0.000000e+00 : f32
      %55 = vector.broadcast %cst_16 : f32 to vector<8x5xf32>
      %c0_17 = arith.constant 0 : index
      %c0_18 = arith.constant 0 : index
      %56 = vector.load %arg4[%c0_17, %c0_18] : memref<8x8xf32, #tpu.memory_space<vmem>>, vector<8x8xf32>
      %57 = tpu.concatenate %48, %51, %54, %55 in 1 : vector<8x1xf32>, vector<8x1xf32>, vector<8x1xf32>, vector<8x5xf32> -> vector<8x8xf32>
      %58 = arith.addf %56, %57 : vector<8x8xf32>
      %c0_19 = arith.constant 0 : index
      %c0_20 = arith.constant 0 : index
      %59 = vector.load %arg4[%c0_19, %c0_20] : memref<8x8xf32, #tpu.memory_space<vmem>>, vector<8x8xf32>
      tpu.vector_store %arg4[%c0_19, %c0_20], %58 {strides = array<i32>} : memref<8x8xf32, #tpu.memory_space<vmem>>, vector<8x8xf32>,
    } else {
    }
    return
  }
  func.func @transform_0(%arg0: i32, %arg1: i32) -> (i32, i32) {
    %c0_i32 = arith.constant 0 : i32
    return %arg0, %arg1 : i32, i32
  }
  func.func @transform_1(%arg0: i32, %arg1: i32) -> (i32, i32) {
    %c0_i32 = arith.constant 0 : i32
    return %arg0, %arg1 : i32, i32
  }
  func.func @transform_2(%arg0: i32, %arg1: i32) -> (i32, i32) {
    %c0_i32 = arith.constant 0 : i32
    %c0_i32_0 = arith.constant 0 : i32
    return %arg0, %c0_i32 : i32, i32
  }
}

</mosaic_0001>

<bundles_post_ra>
// kernel: vat_loss_validate.1
= control target key start
LH: loop header
LB: loop body
LE: loop exit
PB: predicated region body
PF: predicated region fallthrough
CT: control target
= control target key end

     0   :  { %s599_s9 = smov 0   ;;  %s601_s10 = smov 0   ;;  %s728_s0 = inlined_call_operand.vmem [shape: f32[12,600], index: 0, kind: input, shape index: {}]   ;;  %s729_s1 = inlined_call_operand.vmem [shape: f32[12,600], index: 1, kind: input, shape index: {}]   ;;  %s730_s2 = inlined_call_operand.vmem [shape: f32[12,8], index: 2, kind: output, shape index: {}]  }
   0x1   :  { %s603_s11 = smov 0   ;;  %s605_s12 = smov 0  }
   0x2   :  { %s607_s13 = smov 0  }
   0x3 LB: > { %s21_s14 = sadd.s32 1, %s573_s11  ;;  %s24_s15 = sadd.s32 1, %s577_s12  ;;  %s581_s13 = sphi %s607_s13, %s12_s13   ;;  %s577_s12 = sphi %s605_s12, %s739_s12   ;;  %s573_s11 = sphi %s603_s11, %s738_s11   ;;  %s569_s10 = sphi %s601_s10, %s737_s10   ;;  %s565_s9 = sphi %s599_s9, %s736_s9  }
   0x4   : > { %p22_p0 = scmp.ge.s32.totalorder %s21_s14, 3  ;;  %p474_p1 = scmp.ge.s32.totalorder %s581_s13, 1 }
   0x5   : > { %p164_p2 = scmp.lt.s32.totalorder %s581_s13, 7 }
   0x6   : > { %s741_s14 = smov (%p22_p0, %s21_s14), 0  ;;  %s743_s15 = smov (!%p22_p0, %s24_s15), %s577_s12 }
   0x7   : > { %p165_p3 = pnand %p474_p1, %p164_p2  ;;  %p26_p4 = scmp.ge.s32.totalorder %s743_s15, 2 }
   0x8   : > { %s475_s16 = sshll.u32 (!%p165_p3), %s565_s9, 1  ;;  %p211_p5 = scmp.lt.s32.totalorder (!%p165_p3), %s569_s10, 1 }
   0x9   : > { %s745_s15 = smov (%p26_p4, %s743_s15), 0  ;;  %168 = sbr.rel (%p165_p3) target bundleno = 394 (0x18a), region = 28 }
   0xa   : > { %p213_p6 = scmp.lt.s32.totalorder (!%p165_p3), %s475_s16, 4  ;;  %p480_p7 = scmp.ne.s32.totalorder (!%p165_p3), %s565_s9, 0 }
   0xe   : > { %s212_s17 = scalar_select %p211_p5, %s569_s10, 1 }
   0xf   : > { %s747_s16 = smov (!%p213_p6, %s475_s16), 4 }
  0x10   : > { %s485_s18 = smul.u32 5, %s212_s17  ;;  %s479_s19 = sshll.u32 %s212_s17, 3 }
  0x11   : > { %s639_s22 = scalar_lea.vmem %s730_s2, %s479_s19  ;;  %249 = sbr.rel (%p480_p7) target bundleno = 24 (0x18), region = 32 }
  0x12   : > { %s216_s23 = sadd.s32 %s485_s18, %s747_s16 }
  0x13   : > { %s476_s24 = sshll.u32 %s216_s23, 3 }
  0x14   : > { %s218_s27 = scalar_lea.vmem %s728_s0, %s476_s24  ;;  %s236_s30 = scalar_lea.vmem %s729_s1, %s476_s24 }
  0x16   : > { %vm250_vm0 = vcmask 64512   ;;  %v583_v0 = vmov 0.0  }
  0x17   : > { %251 = vst.msk [vmem:[%s639_s22] sm:$0xff] %vm250_vm0, %v583_v0 }
  0x18 PF: > { %v649_v1 = vld [vmem:[%s218_s27] sm:$0xff]  ;;  %v651_v2 = vld [vmem:[%s218_s27 + $0x8] sm:$0xff]  ;;  %p256_p8 = scmp.eq.s32.totalorder %s569_s10, 1  ;;  %p257_p9 = scmp.eq.s32.totalorder %s565_s9, 2 }
  0x19   : > { %v653_v3 = vld [vmem:[%s236_s30] sm:$0xff]  ;;  %v657_v4 = vld [vmem:[%s236_s30 + $0x8] sm:$0xff] }
  0x1a   : > { %p659_p10 = por %p257_p9, %p256_p8 }
  0x1b   : > { %v262_v5 = vlaneseq (%p659_p10)  ;;  %s481_s4 = sshll.u32 (%p659_p10), %s569_s10, 3  ;;  %s482_s5 = sshll.u32 (%p659_p10), %s565_s9, 8  ;;  %vm323_vm6 = vcmask (%p659_p10), 7168   ;;  %vm325_vm7 = vcmask (%p659_p10), 15360   ;;  %vm327_vm8 = vcmask (%p659_p10), 23552  }
  0x1c   : > { %261 = sbr.rel (!%p659_p10) target bundleno = 213 (0xd5), region = 36  ;;  %v265_v6 = vstv (%p659_p10), %s481_s4  ;;  %v272_v7 = vstv (%p659_p10), %s482_s5  ;;  %vm330_vm9 = vcmask (%p659_p10), 64512  }
  0x1d   : > { %v263_v8 = vshrl.u32 (%p659_p10), %v262_v5, 7  ;;  %v269_v9 = vand.u32 (%p659_p10), 127, %v262_v5 }
  0x1e   : > { %v322_v57 = vld [vmem:[%s639_s22] sm:$0xff] (%p659_p10) }
  0x1f   : > { %v266_v10 = vadd.s32 (%p659_p10), %v265_v6, %v263_v8  ;;  %v270_v11 = vadd.s32 (%p659_p10), 128, %v269_v9  ;;  %v273_v12 = vadd.s32 (%p659_p10), %v272_v7, %v269_v9 }
  0x21   : > { %vm267_vm1 = vcmp.lt.s32.totalorder %v266_v10, 12  ;;  %v274_v13 = vadd.s32 %v272_v7, %v270_v11  ;;  %vm275_vm2 = vcmp.lt.s32.totalorder %v273_v12, 600 }
  0x22   : > { %vm667_vm3 = vmand %vm267_vm1, %vm275_vm2 }
  0x23   : > { %vm276_vm4 = vcmp.lt.s32.totalorder %v274_v13, 600  ;;  %v279_v15 = vsel %vm667_vm3, %v649_v1, 0.0  ;;  %v281_v17 = vsel %vm667_vm3, %v653_v3, 0.0 }
  0x24   : > { %vm674_vm5 = vmand %vm267_vm1, %vm276_vm4  ;;  %v287_v18 = vsub.f32 1.0, %v279_v15  ;;  %v297_v19 = vadd.f32 1e-06, %v279_v15  ;;  %v317_v21 = vmul.f32 %v281_v17, %v279_v15  ;;  %v283_v29 = vsub.f32 1.0, %v281_v17 }
  0x25   : > { %v280_v20 = vsel %vm674_vm5, %v651_v2, 0.0  ;;  %v282_v22 = vsel %vm674_vm5, %v657_v4, 0.0  ;;  %v312_v48 = vadd.f32 %v281_v17, %v279_v15 }
  0x26   : > { %v288_v23 = vsub.f32 1.0, %v280_v20  ;;  %v289_v24 = vadd.f32 1e-06, %v287_v18  ;;  %v298_v25 = vadd.f32 1e-06, %v280_v20  ;;  %527 = vlog2.f32 %v297_v19 }
  0x27   : > { %v318_v26 = vmul.f32 %v282_v22, %v280_v20  ;;  %v284_v30 = vsub.f32 1.0, %v282_v22  ;;  %v285_v32 = vsub.f32 0.0, %v283_v29  ;;  %v313_v49 = vadd.f32 %v282_v22, %v280_v20 }
  0x28   : > { %v290_v27 = vadd.f32 1e-06, %v288_v23  ;;  %529 = vlog2.f32 %v289_v24 }
  0x29   : > { %531 = vlog2.f32 %v298_v25  ;;  %v319_v28 = vadd.f32 %v318_v26, %v317_v21  ;;  %v286_v36 = vsub.f32 0.0, %v284_v30  ;;  %v314_v52 = vadd.f32 %v313_v49, %v312_v48 }
  0x2a   : > { %533 = vlog2.f32 %v290_v27 }
  0x2b   : > { %320 = vadd.xlane.f32.xlu1 %v319_v28 }
  0x33   : > { %v528_v31 = vpop.eup %527 }
  0x34   : > { %v300_v34 = vmul.f32 0.6931472, %v528_v31 }
  0x35   : > { %v530_v33 = vpop.eup %529 }
  0x36   : > { %v532_v35 = vpop.eup %531  ;;  %v292_v37 = vmul.f32 0.6931472, %v530_v33  ;;  %v303_v40 = vmul.f32 %v300_v34, %v281_v17 }
  0x37   : > { %v534_v38 = vpop.eup %533  ;;  %v302_v39 = vmul.f32 0.6931472, %v532_v35 }
  0x38   : > { %v294_v41 = vmul.f32 0.6931472, %v534_v38  ;;  %v295_v42 = vmul.f32 %v292_v37, %v285_v32 }
  0x39   : > { %v304_v43 = vmul.f32 %v302_v39, %v282_v22 }
  0x3a   : > { %v296_v44 = vmul.f32 %v294_v41, %v286_v36  ;;  %v305_v45 = vsub.f32 %v295_v42, %v303_v40 }
  0x3c   : > { %v306_v46 = vsub.f32 %v296_v44, %v304_v43  ;;  %v307_v47 = vsel %vm667_vm3, %v305_v45, 0.0 }
  0x3e   : > { %v308_v50 = vsel %vm674_vm5, %v306_v46, 0.0 }
  0x3f   : > { %v309_v51 = vadd.f32 %v308_v50, %v307_v47 }
  0x41   : > { %310 = vadd.xlane.f32.xlu0 %v309_v51 }
  0x45   : > { %315 = vadd.xlane.f32.xlu0 %v314_v52 }
  0xb4   : > { %v321_v54 = vpop.xlane.xlu1 %320 }
  0xca   : > { %v311_v53 = vpop.xlane.xlu0 %310 }
  0xce   : > { %v316_v55 = vpop.xlane.xlu0 %315 }
  0xcf   : > { %v324_v56 = vsel %vm323_vm6, %v311_v53, %v316_v55 }
  0xd0   : > { %v326_v58 = vsel %vm325_vm7, %v324_v56, %v321_v54 }
  0xd1   : > { %v328_v59 = vsel %vm327_vm8, %v326_v58, 0.0 }
  0xd2   : > { %v329_v60 = vadd.f32 %v328_v59, %v322_v57 }
  0xd4   : > { %331 = vst.msk [vmem:[%s639_s22] sm:$0xff] %vm330_vm9, %v329_v60 }
  0xd5 PF: > { %334 = sbr.rel (%p659_p10) target bundleno = 394 (0x18a), region = 40 }
  0xda   : > { %v339_v61 = vsub.f32 1.0, %v649_v1  ;;  %v340_v62 = vsub.f32 1.0, %v651_v2  ;;  %v349_v63 = vadd.f32 1e-06, %v649_v1  ;;  %v350_v6 = vadd.f32 1e-06, %v651_v2 }
  0xdb   : > { %v367_v7 = vmul.f32 %v653_v3, %v649_v1  ;;  %v368_v8 = vmul.f32 %v657_v4, %v651_v2  ;;  %v335_v10 = vsub.f32 1.0, %v653_v3  ;;  %v336_v11 = vsub.f32 1.0, %v657_v4  ;;  %v372_v36 = vld [vmem:[%s639_s22] sm:$0xff] }
  0xdc   : > { %v341_v0 = vadd.f32 1e-06, %v339_v61  ;;  %v342_v5 = vadd.f32 1e-06, %v340_v62  ;;  %535 = vlog2.f32 %v349_v63  ;;  %v362_v28 = vadd.f32 %v653_v3, %v649_v1 }
  0xdd   : > { %v369_v9 = vadd.f32 %v368_v8, %v367_v7  ;;  %v337_v13 = vsub.f32 0.0, %v335_v10  ;;  %v338_v15 = vsub.f32 0.0, %v336_v11  ;;  %v363_v29 = vadd.f32 %v657_v4, %v651_v2 }
  0xde   : > { %537 = vlog2.f32 %v341_v0  ;;  %vm373_vm10 = vcmask 7168   ;;  %vm375_vm11 = vcmask 15360   ;;  %vm377_vm12 = vcmask 23552  }
  0xdf   : > { %539 = vlog2.f32 %v342_v5  ;;  %370 = vadd.xlane.f32.xlu1 %v369_v9  ;;  %v364_v31 = vadd.f32 %v363_v29, %v362_v28  ;;  %vm380_vm13 = vcmask 64512  }
  0xe0   : > { %541 = vlog2.f32 %v350_v6 }
  0xe9   : > { %v536_v12 = vpop.eup %535 }
  0xea   : > { %v352_v16 = vmul.f32 0.6931472, %v536_v12 }
  0xeb   : > { %v538_v14 = vpop.eup %537 }
  0xec   : > { %v540_v17 = vpop.eup %539  ;;  %v344_v18 = vmul.f32 0.6931472, %v538_v14  ;;  %v355_v21 = vmul.f32 %v352_v16, %v653_v3 }
  0xed   : > { %v542_v19 = vpop.eup %541  ;;  %v346_v20 = vmul.f32 0.6931472, %v540_v17 }
  0xee   : > { %v347_v22 = vmul.f32 %v344_v18, %v337_v13  ;;  %v354_v23 = vmul.f32 0.6931472, %v542_v19 }
  0xef   : > { %v348_v24 = vmul.f32 %v346_v20, %v338_v15 }
  0xf0   : > { %v356_v25 = vmul.f32 %v354_v23, %v657_v4  ;;  %v357_v26 = vsub.f32 %v347_v22, %v355_v21 }
  0xf2   : > { %v358_v27 = vsub.f32 %v348_v24, %v356_v25 }
  0xf4   : > { %v359_v30 = vadd.f32 %v358_v27, %v357_v26 }
  0xf6   : > { %360 = vadd.xlane.f32.xlu0 %v359_v30 }
  0xfa   : > { %365 = vadd.xlane.f32.xlu0 %v364_v31 }
 0x168   : > { %v371_v33 = vpop.xlane.xlu1 %370 }
 0x17f   : > { %v361_v32 = vpop.xlane.xlu0 %360 }
 0x183   : > { %v366_v34 = vpop.xlane.xlu0 %365 }
 0x184   : > { %v374_v35 = vsel %vm373_vm10, %v361_v32, %v366_v34 }
 0x185   : > { %v376_v37 = vsel %vm375_vm11, %v374_v35, %v371_v33 }
 0x186   : > { %v378_v38 = vsel %vm377_vm12, %v376_v37, 0.0 }
 0x187   : > { %v379_v1 = vadd.f32 %v378_v38, %v372_v36 }
 0x189   : > { %381 = vst.msk [vmem:[%s639_s22] sm:$0xff] %vm380_vm13, %v379_v1 }
 0x18a PF: > { %s12_s13 = sadd.s32 1, %s581_s13   ;;  %s736_s9 = smov %s573_s11 }
 0x18b   : > { %p9_p11 = scmp.ge.s32.totalorder %s12_s13, 8   ;;  %s737_s10 = smov %s577_s12 }
 0x18c   : > { %s738_s11 = smov %s741_s14  ;;  %s739_s12 = smov %s745_s15 }
 0x18d   :  { %11 = sbr.rel (!%p9_p11) target bundleno = 3 (0x3), region = 73 }

</bundles_post_ra>
